<compile_context>
chip_gen: v7x
topology: tpu7x:2x2x1
jax: 0.10.0
libtpu: 0.0.40
codegen_flags: <defaults>
</compile_context>

<pallas_src>
import math
import functools

import jax
import jax.numpy as jnp
from jax.experimental import pallas as pl
from jax.experimental.pallas import tpu as pltpu


def _round_up(n: int, m: int) -> int:
    return ((n + m - 1) // m) * m


def _vmem_budget_and_limit():
    """Pick (tile budget, vmem_limit_bytes) from the physical VMEM capacity."""
    try:
        cap = pltpu.get_tpu_info().vmem_capacity_bytes
    except Exception:
        cap = None
    if cap is not None and cap >= (100 << 20):      # v5e / v6e: 128 MiB physical
        return 24 << 20, 64 << 20
    return 12 << 20, 32 << 20                       # v7x (64 MiB) or unknown: conservative


def _choose_batch_tile(batch: int, embedding_dim: int, out_itemsize: int,
                       budget_bytes: int) -> int:
    """Largest aligned batch tile whose working set fits the VMEM budget."""
    half_dim = embedding_dim // 2
    # Sub-32-bit outputs need (16, 128) min tiles; f32 needs (8, 128).
    align = 16 if out_itemsize < 4 else 8
    # Per-batch-row working set:
    #   2x double-buffered output block        : 2 * E * out_itemsize
    #   f32 temporaries (arg, sin, cos, slack) : 4 * half_dim * 4
    #   2x double-buffered (tb, 1) input block, last dim lane-padded to 128 f32 lanes
    per_row = 2 * embedding_dim * out_itemsize + 4 * half_dim * 4 + 2 * 128 * 4
    tb = max(align, (budget_bytes // per_row) // align * align)
    tb = min(tb, 4096)                      # keep blocks big, amortize ~0.35us/grid-step
    tb = min(tb, _round_up(batch, align))   # don't exceed the (aligned) batch
    return tb


def _step_embedding_kernel(x_ref, dt_ref, out_ref, *, scale):
    # x_ref:   (TB, 1)           f32 timesteps
    # dt_ref:  (1, half_dim)     f32 div_term (same block every grid step -> resident)
    # out_ref: (TB, 2, half_dim) [:, 0, :] = sin, [:, 1, :] = cos (both lane-aligned)
    # (scale * x) * div_term matches the PyTorch evaluation/rounding order.
    arg = (x_ref[...] * scale) * dt_ref[...]                    # (TB, H) via VPU broadcast
    out_ref[:, 0, :] = jnp.sin(arg).astype(out_ref.dtype)
    out_ref[:, 1, :] = jnp.cos(arg).astype(out_ref.dtype)


def make_div_term(embedding_dim: int) -> jnp.ndarray:
    """Identical to the PyTorch __init__ buffer."""
    half_dim = embedding_dim // 2
    div = math.log(10000.0) / (half_dim - 1)
    return jnp.exp(jnp.arange(half_dim, dtype=jnp.float32) * -div)


def step_embedding(x: jnp.ndarray,
                   embedding_dim: int,
                   scale: float = 1000.0,
                   out_dtype=jnp.float32) -> jnp.ndarray:
    """x: (B,) float timesteps -> (B, embedding_dim) sinusoidal embedding [sin | cos]."""
    assert x.ndim == 1
    assert embedding_dim % 2 == 0
    # half_dim == 1 would divide by zero (same as the PyTorch original).
    assert embedding_dim >= 4, "embedding_dim must be >= 4 (half_dim - 1 > 0)"

    B = x.shape[0]
    half_dim = embedding_dim // 2
    out_itemsize = jnp.dtype(out_dtype).itemsize

    budget, vmem_limit = _vmem_budget_and_limit()
    tb = _choose_batch_tile(B, embedding_dim, out_itemsize, budget)
    grid = (pl.cdiv(B, tb),)                # ragged last block handled by Pallas masking

    x2d = x.astype(jnp.float32).reshape(B, 1)
    div_term = make_div_term(embedding_dim).reshape(1, half_dim)

    kernel = functools.partial(_step_embedding_kernel, scale=float(scale))

    cost = pl.CostEstimate(
        flops=10 * B * embedding_dim,
        transcendentals=B * embedding_dim,
        bytes_accessed=B * embedding_dim * out_itemsize + 4 * B + 4 * half_dim,
    )

    out3 = pl.pallas_call(
        kernel,
        out_shape=jax.ShapeDtypeStruct((B, 2, half_dim), out_dtype),
        grid=grid,
        in_specs=[
            pl.BlockSpec((tb, 1), lambda i: (i, 0)),
            pl.BlockSpec((1, half_dim), lambda i: (0, 0)),
        ],
        out_specs=pl.BlockSpec((tb, 2, half_dim), lambda i: (i, 0, 0)),
        compiler_params=pltpu.CompilerParams(
            dimension_semantics=("parallel",),
            vmem_limit_bytes=vmem_limit,
        ),
        cost_estimate=cost,
    )(x2d, div_term)

    # Row-major contiguous reshape == concat([sin, cos], axis=1); no data movement.
    return out3.reshape(B, embedding_dim)


def step_embedding_ref(x: jnp.ndarray, embedding_dim: int, scale: float = 1000.0) -> jnp.ndarray:
    """Pure-JAX reference mirroring the PyTorch forward."""
    div_term = make_div_term(embedding_dim)
    arg = scale * x[:, None] * div_term[None]
    return jnp.concatenate([jnp.sin(arg), jnp.cos(arg)], axis=1)


if __name__ == "__main__":
    key = jax.random.PRNGKey(0)
    B = 8
    embedding_dim = 32
    scale = 1000.0

    # Timesteps in [0, 1), like typical rectified-flow t values.
    x = jax.random.uniform(key, (B,), dtype=jnp.float32)

    out = step_embedding(x, embedding_dim, scale)
    out = jax.block_until_ready(out)

    ref = step_embedding_ref(x, embedding_dim, scale)
    assert out.shape == (B, embedding_dim), out.shape
    # With scale=1000 the sin/cos arguments reach O(1000) rad; f32 ulp there is ~6e-5,
    # and the in-kernel sin/cos lowering may round slightly differently than XLA's.
    assert jnp.allclose(out, ref, atol=1e-3, rtol=1e-3), "mismatch vs reference"

    print("KERNEL_OK")
</pallas_src>

<mosaic_0001>
module attributes {stable_mosaic.version = 11 : i64} {
  func.func @_step_embedding_kernel(%arg0: i32, %arg1: memref<8x1xf32, #tpu.memory_space<vmem>>, %arg2: memref<1x16xf32, #tpu.memory_space<vmem>>, %arg3: memref<8x2x16xf32, #tpu.memory_space<vmem>>) attributes {dimension_semantics = [#tpu.dimension_semantics<parallel>], iteration_bounds = array<i64: 1>, scalar_prefetch = 0 : i64, scratch_operands = 0 : i64, tpu.core_type = #tpu.core_type<tc>, window_params = [{transform_indices = @transform_0, window_bounds = array<i64: 8, 1>}, {pipeline_mode = #tpu.pipeline_mode<synchronous>, transform_indices = @transform_1, window_bounds = array<i64: 1, 16>}, {transform_indices = @transform_2, window_bounds = array<i64: 8, 2, 16>}]} {
    %c0 = arith.constant 0 : index
    %c0_0 = arith.constant 0 : index
    %0 = vector.load %arg1[%c0, %c0_0] : memref<8x1xf32, #tpu.memory_space<vmem>>, vector<8x1xf32>
    %cst = arith.constant 1.000000e+03 : f32
    %1 = vector.broadcast %cst : f32 to vector<8x1xf32>
    %2 = arith.mulf %0, %1 : vector<8x1xf32>
    %c0_1 = arith.constant 0 : index
    %c0_2 = arith.constant 0 : index
    %3 = vector.load %arg2[%c0_1, %c0_2] : memref<1x16xf32, #tpu.memory_space<vmem>>, vector<1x16xf32>
    %4 = vector.broadcast %2 : vector<8x1xf32> to vector<8x16xf32>
    %5 = vector.broadcast %3 : vector<1x16xf32> to vector<8x16xf32>
    %6 = arith.mulf %4, %5 : vector<8x16xf32>
    %7 = math.sin %6 : vector<8x16xf32>
    %c0_3 = arith.constant 0 : index
    %c0_4 = arith.constant 0 : index
    %c0_5 = arith.constant 0 : index
    %8 = vector.load %arg3[%c0_3, %c0_4, %c0_5] : memref<8x2x16xf32, #tpu.memory_space<vmem>>, vector<8x1x16xf32>
    %9 = vector.shape_cast %8 : vector<8x1x16xf32> to vector<8x16xf32>
    %10 = vector.shape_cast %7 : vector<8x16xf32> to vector<8x1x16xf32>
    tpu.vector_store %arg3[%c0_3, %c0_4, %c0_5], %10 {strides = array<i32>} : memref<8x2x16xf32, #tpu.memory_space<vmem>>, vector<8x1x16xf32>,
    %11 = math.cos %6 : vector<8x16xf32>
    %c0_6 = arith.constant 0 : index
    %c1 = arith.constant 1 : index
    %c0_7 = arith.constant 0 : index
    %12 = vector.load %arg3[%c0_6, %c1, %c0_7] : memref<8x2x16xf32, #tpu.memory_space<vmem>>, vector<8x1x16xf32>
    %13 = vector.shape_cast %12 : vector<8x1x16xf32> to vector<8x16xf32>
    %14 = vector.shape_cast %11 : vector<8x16xf32> to vector<8x1x16xf32>
    tpu.vector_store %arg3[%c0_6, %c1, %c0_7], %14 {strides = array<i32>} : memref<8x2x16xf32, #tpu.memory_space<vmem>>, vector<8x1x16xf32>,
    return
  }
  func.func @transform_0(%arg0: i32) -> (i32, i32) {
    %c0_i32 = arith.constant 0 : i32
    %c0_i32_0 = arith.constant 0 : i32
    return %arg0, %c0_i32 : i32, i32
  }
  func.func @transform_1(%arg0: i32) -> (i32, i32) {
    %c0_i32 = arith.constant 0 : i32
    %c0_i32_0 = arith.constant 0 : i32
    %c0_i32_1 = arith.constant 0 : i32
    return %c0_i32, %c0_i32_0 : i32, i32
  }
  func.func @transform_2(%arg0: i32) -> (i32, i32, i32) {
    %c0_i32 = arith.constant 0 : i32
    %c0_i32_0 = arith.constant 0 : i32
    %c0_i32_1 = arith.constant 0 : i32
    return %arg0, %c0_i32, %c0_i32_0 : i32, i32, i32
  }
}

</mosaic_0001>

<bundles_post_ra>
// kernel: tpu_custom_call.1
= control target key start
LH: loop header
LB: loop body
LE: loop exit
PB: predicated region body
PF: predicated region fallthrough
CT: control target
= control target key end

     0   :  { %v436_v1 = vmov 0   ;;  %s517_s0 = inlined_call_operand.vmem [shape: f32[8,1], index: 0, kind: input, shape index: {}]   ;;  %s518_s1 = inlined_call_operand.vmem [shape: f32[1,16], index: 1, kind: input, shape index: {}]   ;;  %s519_s2 = inlined_call_operand.hbm [shape: f32[8,2,16], index: 2, kind: output, shape index: {}]  }
   0x1   :  { %v12_v0 = vld [vmem:[%s517_s0] sm:$0xff]  ;;  %407 = vset.pattern.permute.xlu0 %v436_v1 }
   0x2   :  { %v13_v2 = vmul.f32 1000.0, %v12_v0 }
   0x4   :  { %17 = vperm.xlu0 %407, %v13_v2  }
   0x5   :  { %7 = vsyncpa [#allocation3], 0  ;;  %v383_v3 = vld [vmem:[%s518_s1] ss:$0 sm:$0xff]  ;;  %v437_v16 = vmov 683565275  }
   0x6   :  { %v438_v18 = vmov 2475754826   ;;  %v439_v21 = vmov 2131351028   ;;  %v440_v24 = vmov 2102212464  }
   0x7   :  { %v441_v27 = vmov 920167782   ;;  %v442_v30 = vmov 1326507024   ;;  %s444_s0 = smov [#allocation2]  }
   0x8   :  { %s372_s1 = sshll.u32 %s444_s0, 4  ;;  %s373_s1 = int_to_ptr.vmem [resolvable:$true] %s372_s1 }
   0x9   :  { %s412_s13 = scalar_lea.vmem %s373_s1, 256  ;;  %p417_p1 = scmp.lt.s32.totalorder %s373_s1, %s373_s1 }
   0xa   :  { %p413_p0 = scmp.ne.s32.totalorder %s373_s1, %s412_s13  ;;  %p418_p2 = scmp.lt.s32.totalorder %s412_s13, %s412_s13 }
   0xc   :  { %p419_p3 = por %p418_p2, %p417_p1 }
   0xe   :  { %p420_p4 = pnand %p419_p3, %p413_p0 }
  0x83   :  { %v18_v4 = vpop.permute.xlu0 %17 }
  0x84   :  { %v468_v5 = vmul.f32 %v383_v3, %v18_v4 }
  0x86   :  { %v30_v6 = vand.u32 2139095040, %v468_v5  ;;  %v27_v10 = vand.u32 2147483647, %v468_v5  ;;  %vm29_vm7 = vcmp.lt.s32.totalorder %v468_v5, 0  ;;  %vm119_vm15 = vweird.f32 %v468_v5 }
  0x88   :  { %v31_v7 = vshrl.u32 %v30_v6, 23  ;;  %v34_v13 = vand.u32 8388607, %v27_v10  ;;  %vm28_vm8 = vcmp.le.f32.partialorder %v27_v10, 0.7853982 }
  0x8a   :  { %v384_v8 = vadd.s32 4294967169, %v31_v7  ;;  %v35_v32 = vor.u32 8388608, %v34_v13 }
  0x8c   :  { %v37_v9 = vadd.s32 1, %v384_v8  ;;  %v75_v46 = vshll.u32 %v35_v32, 8 }
  0x8e   :  { %vm38_vm0 = vcmp.gt.s32.totalorder %v37_v9, 0 }
  0x8f   :  { %v39_v11 = vsel %vm38_vm0, %v37_v9, 0  ;;  %vm189_vm0 = vcmask 122880  }
  0x90   :  { %v41_v12 = vand.u32 31, %v39_v11  ;;  %v40_v15 = vshrl.u32 %v39_v11, 5 }
  0x92   :  { %v42_v14 = vsub.s32 32, %v41_v12  ;;  %v44_v17 = vshll.u32 %v437_v16, %v41_v12  ;;  %v47_v19 = vshll.u32 %v438_v18, %v41_v12  ;;  %v50_v23 = vshll.u32 %v439_v21, %v41_v12 }
  0x93   :  { %v53_v26 = vshll.u32 %v440_v24, %v41_v12  ;;  %v56_v29 = vshll.u32 %v441_v27, %v41_v12  ;;  %vm59_vm1 = vcmp.lt.s32.totalorder %v40_v15, 1  ;;  %vm62_vm2 = vcmp.lt.s32.totalorder %v40_v15, 4 }
  0x94   :  { %v45_v20 = vshrl.u32 %v438_v18, %v42_v14  ;;  %v48_v22 = vshrl.u32 %v439_v21, %v42_v14  ;;  %v51_v25 = vshrl.u32 %v440_v24, %v42_v14  ;;  %v54_v28 = vshrl.u32 %v441_v27, %v42_v14 }
  0x95   :  { %v57_v31 = vshrl.u32 %v442_v30, %v42_v14  ;;  %v43_v41 = vshrl.u32 %v437_v16, %v42_v14  ;;  %vm61_vm3 = vcmp.lt.s32.totalorder %v40_v15, 3  ;;  %vm60_vm4 = vcmp.lt.s32.totalorder %v40_v15, 2 }
  0x96   :  { %v46_v33 = vor.u32 %v45_v20, %v44_v17  ;;  %v49_v34 = vor.u32 %v48_v22, %v47_v19  ;;  %v52_v35 = vor.u32 %v51_v25, %v50_v23  ;;  %v55_v36 = vor.u32 %v54_v28, %v53_v26 }
  0x97   :  { %v58_v37 = vor.u32 %v57_v31, %v56_v29  ;;  %v443_v25 = vmov 1966171168   ;;  %v136_v27 = vlaneseq }
  0x98   :  { %v64_v38 = vsel %vm62_vm2, %v52_v35, 2102212464  ;;  %v67_v39 = vsel %vm59_vm1, %v46_v33, %v49_v34  ;;  %v71_v40 = vsel %vm59_vm1, %v49_v34, %v52_v35  ;;  %v68_v42 = vsel %vm62_vm2, %v55_v36, 920167782 }
  0x99   :  { %v72_v43 = vsel %vm62_vm2, %v58_v37, 1326507024  ;;  %v69_v44 = vsel %vm61_vm3, %v52_v35, %v68_v42  ;;  %v63_v47 = vsel %vm59_vm1, %v43_v41, %v46_v33  ;;  %v65_v48 = vsel %vm61_vm3, %v49_v34, %v64_v38 }
  0x9a   :  { %v73_v45 = vsel %vm61_vm3, %v55_v36, %v72_v43  ;;  %v70_v49 = vsel %vm60_vm4, %v67_v39, %v69_v44  ;;  %v66_v55 = vsel %vm60_vm4, %v63_v47, %v65_v48  ;;  %v134_v26 = vunpack.c.l.s4 %v443_v25 }
  0x9b   :  { %v74_v50 = vsel %vm60_vm4, %v71_v40, %v73_v45  ;;  %v477_v53 = vmul.u32.u64.low %v75_v46, %v70_v49  ;;  %v478_v54 = vmul.u32.u64.high %v75_v46, %v70_v49, %v477_v53  ;;  %v82_v57 = vmul.u32 %v75_v46, %v66_v55 }
  0x9c   :  { %v474_v51 = vmul.u32.u64.low %v75_v46, %v74_v50  ;;  %v475_v52 = vmul.u32.u64.high %v75_v46, %v74_v50, %v474_v51  ;;  %v135_v29 = vunpack.c.0.s8 %v134_v26  ;;  %v137_v30 = vshrl.u32 %v136_v27, 7 }
  0x9d   :  { %v85_v56 = vadd.s32 1, %v478_v54 }
  0x9e   :  { %vm84_vm5 = vc.u32 %v475_v52, %v477_v53  ;;  %v83_v6 = vadd.s32 %v477_v53, %v475_v52  ;;  %v138_v36 = vsub.s32 %v135_v29, %v137_v30 }
  0x9f   :  { %v86_v58 = vsel %vm84_vm5, %v85_v56, %v478_v54 }
  0xa0   :  { %v87_v59 = vadd.s32 %v86_v58, %v82_v57 }
  0xa2   :  { %v88_v60 = vadd.s32 536870912, %v87_v59 }
  0xa4   :  { %v89_v61 = vshrl.u32 %v88_v60, 30 }
  0xa6   :  { %v90_v62 = vshll.u32 %v89_v61, 30  ;;  %v113_v19 = vsub.s32 4, %v89_v61 }
  0xa8   :  { %v91_v63 = vsub.s32 %v87_v59, %v90_v62  ;;  %v114_v22 = vsel %vm29_vm7, %v113_v19, %v89_v61 }
  0xa9   :  { %v116_v24 = vsel %vm28_vm8, 0, %v114_v22 }
  0xaa   :  { %v93_v0 = vsub.s32 0, %v91_v63  ;;  %v120_v28 = vadd.s32 3, %v116_v24  ;;  %v291_v32 = vand.u32 3, %v116_v24 }
  0xac   :  { %v385_v1 = vmin.u32 %v93_v0, %v91_v63  ;;  %v121_v31 = vand.u32 3, %v120_v28  ;;  %vm296_vm10 = vcmp.eq.s32.totalorder %v291_v32, 2  ;;  %vm293_vm12 = vcmp.eq.s32.totalorder %v291_v32, 0 }
  0xad   :  { %vm292_vm14 = vcmp.lt.s32.totalorder %v291_v32, 2 }
  0xae   :  { %v95_v2 = vclz %v385_v1  ;;  %vm126_vm9 = vcmp.eq.s32.totalorder %v121_v31, 2  ;;  %vm123_vm11 = vcmp.eq.s32.totalorder %v121_v31, 0  ;;  %vm122_vm13 = vcmp.lt.s32.totalorder %v121_v31, 2 }
  0xb0   :  { %v386_v3 = vadd.s32 4294967294, %v95_v2 }
  0xb2   :  { %vm387_vm6 = vcmp.lt.s32.totalorder %v386_v3, 0 }
  0xb3   :  { %v98_v4 = vsel %vm387_vm6, 0, %v386_v3 }
  0xb4   :  { %v99_v7 = vsub.s32 32, %v98_v4  ;;  %v103_v8 = vsub.s32 4294967266, %v98_v4  ;;  %v100_v9 = vshll.u32 %v91_v63, %v98_v4 }
  0xb6   :  { %v101_v11 = vshrl.u32 %v83_v6, %v99_v7  ;;  %v104_v12 = vadd.s32 127, %v103_v8 }
  0xb8   :  { %v102_v13 = vor.u32 %v101_v11, %v100_v9  ;;  %v105_v14 = vshll.u32 %v104_v12, 23 }
  0xba   :  { %v106_v15 = vor.u32 4788187, %v105_v14  ;;  %v109_v17 = vcvt.s32.f32 %v102_v13 }
  0xbc   :  { %v107_v16 = vand.u32 2147483647, %v106_v15 }
  0xbe   :  { %v110_v18 = vmul.f32 %v109_v17, %v107_v16 }
  0xc0   :  { %v111_v20 = vxor.u32 2147483648, %v110_v18 }
  0xc2   :  { %v112_v21 = vsel %vm29_vm7, %v111_v20, %v110_v18 }
  0xc3   :  { %v115_v23 = vsel %vm28_vm8, %v468_v5, %v112_v21 }
  0xc4   :  { %408 = vcosq.f32 %v115_v23 }
  0xc5   :  { %410 = vsinq.f32 %v115_v23 }
  0xce   :  { %v409_v33 = vpop.eup %408 }
  0xcf   :  { %v411_v34 = vpop.eup %410  ;;  %v127_v35 = vxor.u32 2147483648, %v409_v33 }
  0xd0   :  { %v124_v10 = vxor.u32 2147483648, %v411_v34 }
  0xd1   :  { %v128_v37 = vsel %vm126_vm9, %v127_v35, %v411_v34  ;;  %v298_v38 = vsel %vm296_vm10, %v127_v35, %v411_v34 }
  0xd2   :  { %v125_v39 = vsel %vm123_vm11, %v409_v33, %v124_v10  ;;  %v295_v40 = vsel %vm293_vm12, %v409_v33, %v124_v10 }
  0xd3   :  { %v129_v41 = vsel %vm122_vm13, %v125_v39, %v128_v37  ;;  %v299_v42 = vsel %vm292_vm14, %v295_v40, %v298_v38 }
  0xd4   :  { %v130_v43 = vsel %vm119_vm15, nan, %v129_v41  ;;  %v300_v44 = vsel %vm119_vm15, nan, %v299_v42 }
  0xd5   :  { %v132_v45 = vcombine.high %v130_v43, %v130_v43  ;;  %v139_v46 = vrot.slane %v130_v43, %v138_v36  ;;  %v302_v47 = vcombine.high %v300_v44, %v300_v44  ;;  %v309_v48 = vrot.slane %v300_v44, %v138_v36 }
  0xd7   :  { %v146_v49 = vrot.slane %v132_v45, %v138_v36  ;;  %v147_v50 = vcombine.high %v139_v46, %v139_v46  ;;  %v155_v51 = vrot.slane %v139_v46, %v138_v36  ;;  %v316_v52 = vrot.slane %v302_v47, %v138_v36 }
  0xd8   :  { %v317_v53 = vcombine.high %v309_v48, %v309_v48  ;;  %v325_v54 = vrot.slane %v309_v48, %v138_v36 }
  0xd9   :  { %v148_v55 = vcombine.high %v146_v49, %v146_v49  ;;  %v162_v56 = vrot.slane %v146_v49, %v138_v36  ;;  %v169_v57 = vrot.slane %v147_v50, %v138_v36  ;;  %v177_v58 = vcombine.high %v155_v51, %v155_v51  ;;  %190 = vst.msk [vmem:[#allocation2] sm:$0x1] %vm189_vm0, %v155_v51 }
  0xda   :  { %v318_v5 = vcombine.high %v316_v52, %v316_v52  ;;  %v332_v59 = vrot.slane %v316_v52, %v138_v36  ;;  %v339_v60 = vrot.slane %v317_v53, %v138_v36  ;;  %v347_v61 = vcombine.high %v325_v54, %v325_v54  ;;  %359 = vst.msk [vmem:[#allocation2 + $0x1] sm:$0x1] %vm189_vm0, %v325_v54 }
  0xdb   :  { %v176_v62 = vrot.slane %v148_v55, %v138_v36  ;;  %v178_v63 = vcombine.high %v162_v56, %v162_v56  ;;  %v179_v0 = vcombine.high %v169_v57, %v169_v57  ;;  %191 = vst.msk [vmem:[#allocation2 + $0x2] sm:$0x1] %vm189_vm0, %v169_v57  ;;  %192 = vst.msk [vmem:[#allocation2 + $0x4] sm:$0x1] %vm189_vm0, %v177_v58 }
  0xdc   :  { %194 = vst.msk [vmem:[#allocation2 + $0x8] sm:$0x1] %vm189_vm0, %v162_v56  ;;  %v346_v1 = vrot.slane %v318_v5, %v138_v36  ;;  %v348_v2 = vcombine.high %v332_v59, %v332_v59  ;;  %v349_v3 = vcombine.high %v339_v60, %v339_v60  ;;  %360 = vst.msk [vmem:[#allocation2 + $0x3] sm:$0x1] %vm189_vm0, %v339_v60 }
  0xdd   :  { %361 = vst.msk [vmem:[#allocation2 + $0x5] sm:$0x1] %vm189_vm0, %v347_v61  ;;  %363 = vst.msk [vmem:[#allocation2 + $0x9] sm:$0x1] %vm189_vm0, %v332_v59  ;;  %v180_v4 = vcombine.high %v176_v62, %v176_v62 }
  0xde   :  { %193 = vst.msk [vmem:[#allocation2 + $0x6] sm:$0x1] %vm189_vm0, %v179_v0  ;;  %195 = vst.msk [vmem:[#allocation2 + $0xa] sm:$0x1] %vm189_vm0, %v176_v62  ;;  %v350_v6 = vcombine.high %v346_v1, %v346_v1 }
  0xdf   :  { %196 = vst.msk [vmem:[#allocation2 + $0xc] sm:$0x1] %vm189_vm0, %v178_v63  ;;  %362 = vst.msk [vmem:[#allocation2 + $0x7] sm:$0x1] %vm189_vm0, %v349_v3 }
  0xe0   :  { %364 = vst.msk [vmem:[#allocation2 + $0xb] sm:$0x1] %vm189_vm0, %v346_v1  ;;  %365 = vst.msk [vmem:[#allocation2 + $0xd] sm:$0x1] %vm189_vm0, %v348_v2 }
  0xe1   :  { %197 = vst.msk [vmem:[#allocation2 + $0xe] sm:$0x1] %vm189_vm0, %v180_v4  ;;  %366 = vst.msk [vmem:[#allocation2 + $0xf] sm:$0x1] %vm189_vm0, %v350_v6 }
  0xe2   :  { %423 = shalt.err (!%p420_p4)
}
  0xe3   :  { %s424_s16 = scalar_lea.hbm %s519_s2, 256 }
  0xe4   :  { %p425_p5 = scmp.ne.s32.totalorder %s519_s2, %s424_s16  ;;  %p428_p6 = scmp.lt.u32.totalorder %s424_s16, %s519_s2 }
  0xe6   :  { %p430_p7 = pnand %p428_p6, %p425_p5 }
  0xe8   :  { %433 = shalt.err (!%p430_p7)
}
  0xe9   :  { %s445_s21 = smov 32   ;;  %s446_s22 = smov 2  }
  0xea   :  { %378 = dma.vmem_to_hbm [thread:$0]  %s373_s1, 256, %s519_s2, [#allocation3], %s445_s21, %s445_s21, %s446_s22  }
  0xeb   :  { %434 = dma.done.wait [#allocation3], 256  }
  0xec   :  { %435 = vsyncadd [#allocation3], 4294967040 }
  0xed   :  { %382 = vsyncpa [#allocation3], 1 }

</bundles_post_ra>
